<compile_context>
chip_gen: v7x
topology: tpu7x:2x2x1
jax: 0.10.0
libtpu: 0.0.40
codegen_flags: <defaults>
</compile_context>

<pallas_src>
import jax
import jax.numpy as jnp
from jax.experimental import pallas as pl
from jax.experimental.pallas import tpu as pltpu


def _make_eca_kernel(k: int, C: int, HW: int):
    pad = (k - 1) // 2
    inv_hw = 1.0 / float(HW)

    def kernel(w_ref, x_ref, o_ref):
        # w_ref: (k,)       f32 conv taps in SMEM (scalar prefetch)
        # x_ref: (Bt, C, HW) batch-folded slab, input dtype
        # o_ref: (Bt, C, HW)
        x = x_ref[...]                                              # (Bt, C, HW)

        # Global average pool over the spatial (lane) axis, accumulated in f32.
        # Mosaic masks the ragged tail vreg, so no explicit lane padding is needed.
        m = jnp.sum(x, axis=2, keepdims=True, dtype=jnp.float32) * inv_hw  # (Bt, C, 1)

        # k-tap cross-correlation along the channel (sublane) axis with zero padding:
        #   y[b, c] = sum_t w[t] * m[b, c + t - pad]
        if pad > 0:
            zcol = jnp.zeros((m.shape[0], pad, 1), jnp.float32)
            mz = jnp.concatenate([zcol, m, zcol], axis=1)           # (Bt, C + 2*pad, 1)
        else:
            mz = m
        y = w_ref[0] * mz[:, 0:C, :]
        for t in range(1, k):
            y = y + w_ref[t] * mz[:, t:t + C, :]                    # (Bt, C, 1)

        # Sigmoid on the tiny (Bt, C, 1) column (EUP), gate the slab in input dtype.
        s = jax.nn.sigmoid(y)                                       # (Bt, C, 1) f32
        o_ref[...] = x * s.astype(x.dtype)

    return kernel


def eca_forward(x, conv_weight):
    """x: (B, C, H, W); conv_weight: (k,) 1D conv taps (odd k). Returns (B, C, H, W)."""
    B, C, H, W = x.shape
    k = int(conv_weight.shape[0])
    HW = H * W

    # (B, C, HW) view — metadata-only reshape, no HBM copy, no padding.
    xr = x.reshape(B, C, HW)
    w = conv_weight.astype(jnp.float32).reshape(k)

    # ---- Per-generation VMEM budget ------------------------------------------------
    # v5e/v6e: 128 MiB physical -> ~96 MiB ceiling; v7x: 64 MiB physical -> ~48 MiB.
    try:
        vmem_cap = pltpu.get_tpu_info().vmem_capacity_bytes
    except Exception:
        vmem_cap = 64 * 1024 * 1024          # conservative fallback (safe on all gens)
    vmem_ceiling = int(min(100 * 1024 * 1024, (vmem_cap * 3) // 4))

    # ---- Batch folding: biggest block that fits, but keep grid >= 2 when B >= 2 -----
    per_batch_bytes = C * HW * x.dtype.itemsize
    # ~4.5x block: 2 input + 2 output double-buffers plus headroom.
    bt_fit = max(1, int(vmem_ceiling // max(1, int(4.5 * per_batch_bytes))))
    bt_parallel = max(1, B // 2) if B >= 2 else 1     # dual-TC / megacore occupancy
    Bt = max(1, min(B, bt_fit, bt_parallel))
    grid_b = pl.cdiv(B, Bt)
    # TODO(synk): if a single batch slab (C*HW) ever exceeds the VMEM budget, tile the
    # channel axis with a (k-1)//2 halo instead of relying on the full-C slab.

    block_bytes = Bt * per_batch_bytes
    vmem_limit = int(min(vmem_ceiling, max(32 * 1024 * 1024, int(4.5 * block_bytes))))

    kernel = _make_eca_kernel(k=k, C=C, HW=HW)

    out = pl.pallas_call(
        kernel,
        out_shape=jax.ShapeDtypeStruct((B, C, HW), x.dtype),
        grid_spec=pltpu.PrefetchScalarGridSpec(
            num_scalar_prefetch=1,                    # conv taps -> SMEM
            grid=(grid_b,),
            in_specs=[
                pl.BlockSpec((Bt, C, HW), lambda b, w_ref: (b, 0, 0)),
            ],
            out_specs=pl.BlockSpec((Bt, C, HW), lambda b, w_ref: (b, 0, 0)),
        ),
        compiler_params=pltpu.CompilerParams(
            dimension_semantics=("parallel",),
            vmem_limit_bytes=vmem_limit,
        ),
        # Donate x's HBM buffer to the output (index 1: index 0 is the prefetch taps).
        input_output_aliases={1: 0},
    )(w, xr)

    return out.reshape(B, C, H, W)


def _eca_reference(x, conv_weight):
    """Pure-JAX reference matching PyTorch Conv1d (cross-correlation) semantics."""
    B, C, H, W = x.shape
    k = conv_weight.shape[0]
    pad = (k - 1) // 2
    m = jnp.mean(x, axis=(2, 3))                                   # (B, C)
    mp = jnp.pad(m, ((0, 0), (pad, pad)))
    y = sum(conv_weight[t] * mp[:, t:t + C] for t in range(k))     # (B, C)
    s = jax.nn.sigmoid(y)
    return x * s[:, :, None, None]


if __name__ == "__main__":
    key = jax.random.PRNGKey(0)
    kx, kw = jax.random.split(key)

    B, C, H, W = 2, 4, 16, 16
    x = jax.random.normal(kx, (B, C, H, W), dtype=jnp.float32)

    # Deterministic Conv1d(1, 1, kernel_size=3, bias=False) weight; only the 3 taps matter.
    k_size = 3
    bound = 1.0 / (1 * k_size) ** 0.5
    conv_weight = jax.random.uniform(kw, (k_size,), dtype=jnp.float32,
                                     minval=-bound, maxval=bound)

    ref = _eca_reference(x, conv_weight)

    out = eca_forward(x, conv_weight)
    out = jax.block_until_ready(out)

    assert out.shape == (B, C, H, W)
    assert jnp.allclose(out, ref, atol=1e-5, rtol=1e-5), "mismatch vs reference"

    print("KERNEL_OK")
</pallas_src>

<mosaic_0001>
module attributes {stable_mosaic.version = 11 : i64} {
  func.func @kernel(%arg0: i32, %arg1: memref<3xf32, #tpu.memory_space<smem>>, %arg2: memref<1x4x256xf32, #tpu.memory_space<vmem>>, %arg3: memref<1x4x256xf32, #tpu.memory_space<vmem>>) attributes {dimension_semantics = [#tpu.dimension_semantics<parallel>], iteration_bounds = array<i64: 2>, scalar_prefetch = 1 : i64, scratch_operands = 0 : i64, tpu.core_type = #tpu.core_type<tc>, window_params = [{transform_indices = @transform_0, window_bounds = array<i64: 1, 4, 256>}, {transform_indices = @transform_1, window_bounds = array<i64: 1, 4, 256>}]} {
    %c0 = arith.constant 0 : index
    %c0_0 = arith.constant 0 : index
    %c0_1 = arith.constant 0 : index
    %0 = vector.load %arg2[%c0, %c0_0, %c0_1] : memref<1x4x256xf32, #tpu.memory_space<vmem>>, vector<1x4x256xf32>
    %cst = arith.constant dense<0.000000e+00> : vector<1x4xf32>
    %1 = vector.multi_reduction <add>, %0, %cst [2] : vector<1x4x256xf32> to vector<1x4xf32>
    %2 = vector.shape_cast %1 : vector<1x4xf32> to vector<1x4x1xf32>
    %cst_2 = arith.constant 3.906250e-03 : f32
    %3 = vector.broadcast %cst_2 : f32 to vector<1x4x1xf32>
    %4 = arith.mulf %2, %3 : vector<1x4x1xf32>
    %cst_3 = arith.constant 0.000000e+00 : f32
    %5 = vector.broadcast %cst_3 : f32 to vector<1x1x1xf32>
    %6 = tpu.concatenate %5, %4, %5 in 1 : vector<1x1x1xf32>, vector<1x4x1xf32>, vector<1x1x1xf32> -> vector<1x6x1xf32>
    %c0_4 = arith.constant 0 : index
    %7 = memref.load %arg1[%c0_4] : memref<3xf32, #tpu.memory_space<smem>>
    %8 = vector.extract_strided_slice %6 {offsets = [0, 0, 0], sizes = [1, 4, 1], strides = [1, 1, 1]} : vector<1x6x1xf32> to vector<1x4x1xf32>
    %9 = vector.broadcast %7 : f32 to vector<1x4x1xf32>
    %10 = arith.mulf %9, %8 : vector<1x4x1xf32>
    %c1 = arith.constant 1 : index
    %11 = memref.load %arg1[%c1] : memref<3xf32, #tpu.memory_space<smem>>
    %12 = vector.extract_strided_slice %6 {offsets = [0, 1, 0], sizes = [1, 4, 1], strides = [1, 1, 1]} : vector<1x6x1xf32> to vector<1x4x1xf32>
    %13 = vector.broadcast %11 : f32 to vector<1x4x1xf32>
    %14 = arith.mulf %13, %12 : vector<1x4x1xf32>
    %15 = arith.addf %10, %14 : vector<1x4x1xf32>
    %c2 = arith.constant 2 : index
    %16 = memref.load %arg1[%c2] : memref<3xf32, #tpu.memory_space<smem>>
    %17 = vector.extract_strided_slice %6 {offsets = [0, 2, 0], sizes = [1, 4, 1], strides = [1, 1, 1]} : vector<1x6x1xf32> to vector<1x4x1xf32>
    %18 = vector.broadcast %16 : f32 to vector<1x4x1xf32>
    %19 = arith.mulf %18, %17 : vector<1x4x1xf32>
    %20 = arith.addf %15, %19 : vector<1x4x1xf32>
    %21 = arith.negf %20 : vector<1x4x1xf32>
    %22 = math.exp %21 : vector<1x4x1xf32>
    %cst_5 = arith.constant 1.000000e+00 : f32
    %23 = vector.broadcast %cst_5 : f32 to vector<1x4x1xf32>
    %24 = arith.addf %23, %22 : vector<1x4x1xf32>
    %25 = arith.divf %23, %24 : vector<1x4x1xf32>
    %26 = vector.broadcast %25 : vector<1x4x1xf32> to vector<1x4x256xf32>
    %27 = arith.mulf %0, %26 : vector<1x4x256xf32>
    %c0_6 = arith.constant 0 : index
    %c0_7 = arith.constant 0 : index
    %c0_8 = arith.constant 0 : index
    %28 = vector.load %arg3[%c0_6, %c0_7, %c0_8] : memref<1x4x256xf32, #tpu.memory_space<vmem>>, vector<1x4x256xf32>
    tpu.vector_store %arg3[%c0_6, %c0_7, %c0_8], %27 {strides = array<i32>} : memref<1x4x256xf32, #tpu.memory_space<vmem>>, vector<1x4x256xf32>,
    return
  }
  func.func @transform_0(%arg0: i32, %arg1: memref<3xf32, #tpu.memory_space<smem>>) -> (i32, i32, i32) {
    %c0_i32 = arith.constant 0 : i32
    %c0_i32_0 = arith.constant 0 : i32
    %c0_i32_1 = arith.constant 0 : i32
    return %arg0, %c0_i32, %c0_i32_0 : i32, i32, i32
  }
  func.func @transform_1(%arg0: i32, %arg1: memref<3xf32, #tpu.memory_space<smem>>) -> (i32, i32, i32) {
    %c0_i32 = arith.constant 0 : i32
    %c0_i32_0 = arith.constant 0 : i32
    %c0_i32_1 = arith.constant 0 : i32
    return %arg0, %c0_i32, %c0_i32_0 : i32, i32, i32
  }
}

</mosaic_0001>

<bundles_post_ra>
// kernel: tpu_custom_call.1
= control target key start
LH: loop header
LB: loop body
LE: loop exit
PB: predicated region body
PF: predicated region fallthrough
CT: control target
= control target key end

     0   :  { %s654_s0 = inlined_call_operand.vmem [shape: f32[3], index: 0, kind: input, shape index: {}]   ;;  %s655_s1 = inlined_call_operand.hbm [shape: f32[2,4,256], index: 1, kind: input, shape index: {}, may-alias: {1,2}]   ;;  %s656_s2 = inlined_call_operand.hbm [shape: f32[2,4,256], index: 2, kind: output, shape index: {}, may-alias: {1,2}]  }
   0x1   :  { %s7_s11 = sshll.u32 %s654_s0, 4  ;;  %s8_s11 = int_to_ptr.vmem [resolvable:$true] %s7_s11 }
   0x2   :  { %s354_s12 = scalar_lea.vmem %s8_s11, 16  ;;  %p359_p1 = scmp.lt.s32.totalorder %s8_s11, %s8_s11 }
   0x3   :  { %p355_p0 = scmp.ne.s32.totalorder %s8_s11, %s354_s12  ;;  %p360_p2 = scmp.lt.s32.totalorder %s354_s12, %s354_s12 }
   0x5   :  { %p361_p3 = por %p360_p2, %p359_p1 }
   0x7   :  { %p362_p4 = pnand %p361_p3, %p355_p0 }
   0x9   :  { %365 = shalt.err (!%p362_p4)  }
   0xa   :  { %s466_s13 = smov [#allocation3]  }
   0xb   :  { %10 = dma.vmem_to_smem %s8_s11, 16, %s466_s13, [#allocation2] }
   0xc   :  { %440 = dma.done.wait [#allocation2], 16 }
   0xd   :  { %441 = vsyncadd [#allocation2], 4294967280 }
   0xe   :  { %12 = sfence }
   0xf   :  { %13 = vsyncpa [#allocation5], 0 }
  0x10   :  { %15 = vsyncpa [#allocation5 + $0x1], 0 }
  0x11   :  { %16 = vsyncpa [#allocation6], 0 }
  0x12   :  { %18 = vsyncpa [#allocation6 + $0x1], 0  ;;  %s489_s14 = smov 0   ;;  %s491_s0 = smov 0  }
  0x13   :  { %s493_s15 = smov 0   ;;  %s495_s16 = smov 0  }
  0x14 LB: > { %s510_s17 = sadd.s32 4294967295, %s464_s16   ;;  %s280_s18 = sadd.s32 4294967294, %s464_s16   ;;  %s464_s16 = sphi %s495_s16, %s671_s16   ;;  %s460_s15 = sphi %s493_s15, %s670_s15   ;;  %s456_s0 = sphi %s491_s0, %s669_s0   ;;  %s452_s14 = sphi %s489_s14, %s668_s14  }
  0x15   : > { %s514_s19 = sadd.s32 1, %s464_s16   ;;  %s31_s20 = sadd.s32 1, %s460_s15 }
  0x16   : > { %s28_s21 = ssub.s32 %s464_s16, %s514_s19  ;;  %p38_p5 = scmp.ne.s32.totalorder %s460_s15, %s456_s0 }
  0x17   : > { %p29_p6 = scmp.eq.s32.totalorder %s28_s21, 0  ;;  %p39_p7 = scmp.eq.s32.totalorder %s464_s16, 0 }
  0x18   : > { %p44_p8 = scmp.ne.s32.totalorder %s456_s0, %s452_s14  ;;  %p45_p9 = scmp.eq.s32.totalorder %s510_s17, 0 }
  0x19   : > { %s526_s22 = scalar_select %p29_p6, %s460_s15, %s31_s20  }
  0x1a   : > { %p528_p10 = por %p39_p7, %p38_p5  ;;  %p532_p11 = por %p45_p9, %p44_p8 }
  0x1b   : > { %p68_p12 = scmp.eq.s32.totalorder %s510_s17, 1  ;;  %p74_p13 = scmp.eq.s32.totalorder %s280_s18, 1 }
  0x1c   : > { %p311_p1 = scmp.lt.s32.totalorder %s464_s16, 2  ;;  %s94_s27 = sand.u32 1, %s460_s15  }
  0x1d   : > { %p539_p2 = por %p68_p12, %p38_p5  ;;  %p543_p3 = por %p74_p13, %p44_p8 }
  0x1e   : > { %s297_s28 = sshll.u32 %s464_s16, 7  ;;  %s283_s29 = sshll.u32 %s94_s27, 3 }
  0x1f   : > { %s660_s25 = scalar_select %p539_p2, 1, 0 }
  0x20   : > { %s661_s26 = scalar_select %p543_p3, 1, 0 }
  0x21   : > { %s552_s4 = scalar_lea.hbm %s655_s1, %s297_s28  ;;  %s98_s5 = scalar_lea.vmem [#allocation4], %s283_s29 }
  0x22   : > { %s106_s6 = sshll.u32 %s98_s5, 4  ;;  %p556_p4 = pnand %p311_p1, %p528_p10  ;;  %s560_s6 = int_to_ptr.vmem [resolvable:$true] %s106_s6 }
  0x23   : > { %s95_s8 = scalar_lea.sflag [#allocation5], %s94_s27  ;;  %s366_s9 = scalar_lea.hbm %s552_s4, 128 }
  0x24   : > { %p367_p7 = scmp.ne.s32.totalorder %s552_s4, %s366_s9  ;;  %p368_p8 = pneg %p556_p4 }
  0x25   : > { %s371_s12 = scalar_lea.hbm %s655_s1, 256  ;;  %p372_p10 = scmp.lt.u32.totalorder %s552_s4, %s655_s1 }
  0x26   : > { %p369_p9 = pnand %p368_p8, %p367_p7  ;;  %p373_p13 = scmp.lt.u32.totalorder %s371_s12, %s366_s9 }
  0x27   : > { %p375_p0 = scmp.lt.u32.totalorder %s366_s9, %s552_s4 }
  0x28   : > { %p370_p12 = pneg %p369_p9  ;;  %p374_p1 = por %p373_p13, %p372_p10 }
  0x2a   : > { %p376_p5 = por %p375_p0, %p374_p1 }
  0x2c   : > { %p377_p6 = pnand %p376_p5, %p370_p12 }
  0x2e   : > { %380 = shalt.err (!%p377_p6)
}
  0x2f   : > { %s381_s20 = scalar_lea.vmem %s560_s6, 128  ;;  %s467_s21 = smov [#allocation4]  }
  0x30   : > { %p382_p7 = scmp.ne.s32.totalorder %s560_s6, %s381_s20  ;;  %s386_s23 = sshll.u32 %s467_s21, 4  ;;  %s387_s23 = int_to_ptr.vmem [resolvable:$false] %s386_s23 }
  0x31   : > { %s388_s27 = scalar_lea.vmem %s387_s23, 256  ;;  %p389_p2 = scmp.lt.s32.totalorder %s560_s6, %s387_s23 }
  0x32   : > { %p384_p9 = pnand %p382_p7, %p368_p8  ;;  %p390_p10 = scmp.lt.s32.totalorder %s388_s27, %s381_s20 }
  0x34   : > { %p385_p3 = pneg %p384_p9  ;;  %p391_p13 = por %p390_p10, %p389_p2 }
  0x36   : > { %p392_p0 = pnand %p391_p13, %p385_p3 }
  0x38   : > { %395 = shalt.err (!%p392_p0)
}
  0x39   : > { %306 = dma.hbm_to_vmem [thread:$0]  (!%p556_p4), %s552_s4, 128, %s560_s6, %s95_s8  }
  0x3a   : > { %p663_p5 = scmp.lt.s32.totalorder %s464_s16, 3  ;;  %p664_p6 = scmp.ge.s32.totalorder %s464_s16, 1 }
  0x3c   : > { %p112_p8 = pnand %p664_p6, %p663_p5 }
  0x3d   : > { %s594_s28 = sand.u32 (!%p112_p8), 1, %s456_s0  }
  0x3e   : > { %115 = sbr.rel (%p112_p8) target bundleno = 404 (0x194), region = 24  ;;  %s287_s29 = sshll.u32 (!%p112_p8), %s594_s28, 3 }
  0x3f   : > { %s118_s30 = scalar_lea.sflag (!%p112_p8), [#allocation5], %s594_s28  ;;  %s121_s3 = scalar_lea.vmem (!%p112_p8), [#allocation4], %s287_s29 }
  0x45   : > { %443 = dma.done.wait (%p532_p11), %s118_s30, 128  }
  0x46   : > { %445 = vsyncadd (%p532_p11), %s118_s30, 4294967168  ;;  %vm144_vm0 = vcmask 1043456   ;;  %v140_v0 = vld [vmem:[%s121_s3] sm:$0xff]  ;;  %v468_v5 = vmov 0   ;;  %s289_s4 = sld [smem:[#allocation3 + $0x1]]  ;;  %s290_s5 = sld [smem:[#allocation3 + $0x2]]  ;;  %v188_v27 = vlaneseq }
  0x47   : > { %v142_v1 = vcombine.high %v140_v0, %v140_v0  ;;  %v145_v2 = vsel %vm144_vm0, %v140_v0, 0.0  ;;  %348 = vset.pattern.permute.xlu0 %v468_v5  ;;  %s158_s6 = sld [smem:[#allocation3]]  ;;  %vm154_vm1 = vcmask 1040384   ;;  %vm156_vm2 = vcmask 1044480   ;;  %s298_s24 = sshll.u32 %s510_s17, 7 }
  0x48   : > { %v469_v25 = vmov 839922192   ;;  %v189_v29 = vshrl.u32 %v188_v27, 7  ;;  %s139_s7 = scalar_lea.vmem [#allocation7], %s287_s29  ;;  %s610_s11 = scalar_lea.hbm %s656_s2, %s298_s24 }
  0x49   : > { %v146_v3 = vsel %vm144_vm0, %v142_v1, 0.0  ;;  %v186_v26 = vunpack.c.l.s4 %v469_v25  ;;  %s210_s8 = sshll.u32 %s139_s7, 4  ;;  %s196_s12 = scalar_lea.sflag [#allocation6], %s594_s28  ;;  %s612_s8 = int_to_ptr.vmem [resolvable:$true] %s210_s8 }
  0x4a   : > { %v147_v4 = vadd.f32 %v146_v3, %v145_v2  ;;  %s396_s13 = scalar_lea.vmem %s612_s8, 128  ;;  %p665_p2 = scmp.ne.s32.totalorder %s660_s25, 0 }
  0x4b   : > { %v187_v28 = vunpack.c.0.s8 %v186_v26  ;;  %p397_p11 = scmp.ne.s32.totalorder %s612_s8, %s396_s13  ;;  %s470_s17 = smov [#allocation7]  }
  0x4c   : > { %148 = vadd.xlane.f32.xlu0 %v147_v4  ;;  %v162_v9 = vstv %s289_s4  ;;  %v169_v10 = vstv %s290_s5  ;;  %s400_s18 = sshll.u32 %s470_s17, 4  ;;  %s401_s18 = int_to_ptr.vmem [resolvable:$false] %s400_s18 }
  0x4d   : > { %v159_v12 = vstv %s158_s6  ;;  %v190_v30 = vsub.s32 %v187_v28, %v189_v29  ;;  %p398_p3 = pnand %p397_p11, %p665_p2  ;;  %s402_s20 = scalar_lea.vmem %s401_s18, 256 }
  0x4e   : > { %p403_p12 = scmp.lt.s32.totalorder %s612_s8, %s401_s18  ;;  %p404_p1 = scmp.lt.s32.totalorder %s402_s20, %s396_s13 }
  0x4f   : > { %p399_p4 = pneg %p398_p3 }
  0x50   : > { %p405_p7 = por %p404_p1, %p403_p12 }
  0x52   : > { %p406_p9 = pnand %p405_p7, %p399_p4 }
  0xd9   : > { %v149_v6 = vpop.xlane.xlu0 %148 }
  0xda   : > { %v150_v7 = vmul.f32 0.00390625, %v149_v6 }
  0xdc   : > { %v152_v8 = vrot.slane %v150_v7, 7 }
  0xde   : > { %v155_v11 = vsel %vm154_vm1, 0.0, %v152_v8 }
  0xdf   : > { %v157_v13 = vsel %vm156_vm2, %v155_v11, 0.0 }
  0xe0   : > { %v163_v14 = vmul.f32 %v162_v9, %v157_v13  ;;  %v170_v15 = vmul.f32 %v169_v10, %v157_v13  ;;  %v160_v16 = vmul.f32 %v159_v12, %v157_v13 }
  0xe2   : > { %v165_v17 = vrot.slane %v163_v14, 1  ;;  %v172_v19 = vrot.slane %v170_v15, 2 }
  0xe4   : > { %v167_v18 = vadd.f32 %v165_v17, %v160_v16 }
  0xe6   : > { %v174_v20 = vadd.f32 %v172_v19, %v167_v18 }
  0xe8   : > { %v291_v21 = vmul.f32 -1.442695, %v174_v20 }
  0xea   : > { %350 = vpow2.f32 %v291_v21 }
  0xf4   : > { %v351_v22 = vpop.eup %350 }
  0xf5   : > { %v178_v23 = vadd.f32 1.0, %v351_v22 }
  0xf7   : > { %352 = vrcp.f32 %v178_v23 }
 0x101   : > { %v353_v24 = vpop.eup %352 }
 0x102   : > { %183 = vperm.xlu0 %348, %v353_v24  }
 0x181   : > { %v184_v31 = vpop.permute.xlu0 %183 }
 0x182   : > { %v191_v32 = vrot.slane %v184_v31, %v190_v30 }
 0x184   : > { %v193_v33 = vmul.f32 %v191_v32, %v140_v0 }
 0x186   : > { %194 = vst [vmem:[%s139_s7] sm:$0xff] %v193_v33 }
 0x187   : > { %409 = shalt.err (!%p406_p9)
}
 0x188   : > { %s410_s21 = scalar_lea.hbm %s610_s11, 128  ;;  %s414_s28 = scalar_lea.hbm %s656_s2, 256 }
 0x189   : > { %p411_p10 = scmp.ne.s32.totalorder %s610_s11, %s410_s21  ;;  %p415_p5 = scmp.lt.u32.totalorder %s610_s11, %s656_s2 }
 0x18a   : > { %p416_p6 = scmp.lt.u32.totalorder %s414_s28, %s410_s21  ;;  %p418_p11 = scmp.lt.u32.totalorder %s410_s21, %s610_s11 }
 0x18b   : > { %p412_p13 = pnand %p411_p10, %p665_p2 }
 0x18c   : > { %p417_p8 = por %p416_p6, %p415_p5 }
 0x18d   : > { %p413_p0 = pneg %p412_p13 }
 0x18e   : > { %p419_p3 = por %p418_p11, %p417_p8 }
 0x190   : > { %p420_p4 = pnand %p419_p3, %p413_p0 }
 0x192   : > { %423 = shalt.err (!%p420_p4)
}
 0x193   : > { %301 = dma.vmem_to_hbm [thread:$0]  (%p665_p2), %s612_s8, 128, %s610_s11, %s196_s12  }
 0x194 PF: > { %s222_s3 = sand.u32 1, %s452_s14   ;;  %p666_p12 = scmp.ne.s32.totalorder %s661_s26, 0 }
 0x195   : > { %p667_p1 = scmp.ge.s32.totalorder %s464_s16, 2  ;;  %s223_s4 = scalar_lea.sflag [#allocation6], %s222_s3 }
 0x197   : > { %p308_p7 = pnand %p667_p1, %p666_p12 }
 0x199   : > { %447 = dma.done.wait (!%p308_p7), %s223_s4, 128  }
 0x19a   : > { %449 = vsyncadd (!%p308_p7), %s223_s4, 4294967168  ;;  %p21_p9 = scmp.ge.s32.totalorder %s514_s19, 4   ;;  %s668_s14 = smov %s456_s0 }
 0x19b   : > { %s669_s0 = smov %s460_s15  ;;  %s670_s15 = smov %s526_s22 }
 0x19c   : > { %s671_s16 = smov %s514_s19  ;;  %23 = sbr.rel (!%p21_p9) target bundleno = 20 (0x14), region = 69 }
 0x1a3   :  { %228 = vsyncpa [#allocation5], 1 }
 0x1a4   :  { %230 = vsyncpa [#allocation5 + $0x1], 1 }
 0x1a5   :  { %231 = vsyncpa [#allocation6], 1 }
 0x1a6   :  { %233 = vsyncpa [#allocation6 + $0x1], 1 }

</bundles_post_ra>
